<compile_context>
chip_gen: v6e
topology: v6e:2x2x1
jax: 0.10.0
libtpu: 0.0.40
codegen_flags: <defaults>
</compile_context>

<pallas_src>
import functools

import jax
import jax.numpy as jnp
from jax.experimental import pallas as pl
from jax.experimental.pallas import tpu as pltpu


def _round_up(x, m):
    return ((x + m - 1) // m) * m


def _cdiv(a, b):
    return (a + b - 1) // b


def aggregator_kernel(x_ref, w1_ref, b1_ref, w2_ref, b2_ref, labels_ref,
                      slab_ref, *, store_hidden=True):
    H = w1_ref.shape[1]
    O = w2_ref.shape[1]
    bb = x_ref.shape[0]
    out_dt = slab_ref.dtype

    x = x_ref[...]                       # f32 or bf16 (cast done at the HBM boundary)
    w1 = w1_ref[...]
    w2 = w2_ref[...]

    # layer1: Linear(2H -> H) + ReLU  (f32 accumulation on the MXU)
    h = jnp.dot(x, w1, preferred_element_type=jnp.float32) + b1_ref[...]
    h = jnp.maximum(h, 0.0)                                            # [bb, H] f32

    # aggregate: Linear(H -> O)
    h_mm = h.astype(w2.dtype)            # no-op in the f32 path
    logits = jnp.dot(h_mm, w2, preferred_element_type=jnp.float32) + b2_ref[...]

    labels = labels_ref[...]             # [bb, 1] int32

    if O == 2:
        # Two-column cross-entropy: no cross-lane (XLU) reductions, no one-hot gather.
        l0 = logits[:, 0:1]
        l1 = logits[:, 1:2]
        m = jnp.maximum(l0, l1)
        lse = m + jnp.log(jnp.exp(l0 - m) + jnp.exp(l1 - m))
        picked = jnp.where(labels == 0, l0, l1)
    else:
        # General path for other output_size configs.
        m = jnp.max(logits, axis=-1, keepdims=True)
        lse = m + jnp.log(jnp.sum(jnp.exp(logits - m), axis=-1, keepdims=True))
        class_ids = jax.lax.broadcasted_iota(jnp.int32, (bb, O), 1)
        onehot = (class_ids == labels).astype(jnp.float32)
        picked = jnp.sum(onehot * logits, axis=-1, keepdims=True)

    per_example_loss = lse - picked                                    # [bb, 1]

    # Lane-dense slab stores.  Adjacent narrow stores for logits + loss; the pad
    # lanes [H+O+1, W) are intentionally left untouched (stale VMEM) and are
    # sliced away in the wrapper -- do not compare the raw slab in tests.
    if store_hidden:
        slab_ref[:, 0:H] = h.astype(out_dt)
    slab_ref[:, H:H + O] = logits.astype(out_dt)
    slab_ref[:, H + O:H + O + 1] = per_example_loss.astype(out_dt)


def _pick_batch_tile(B, block_b, sublane):
    """Tile rows: multiple of `sublane`, <= ~block_b, and >=2 (even) grid steps
    when the batch is large enough so v7x's second TensorCore gets work."""
    B_s = _round_up(B, sublane)
    if B_s <= 2 * sublane:
        return B                      # one full-array block; always a legal block shape
    steps = max(2, _cdiv(B_s, block_b))
    if steps % 2:
        steps += 1                    # even step count -> balanced 2-TC split
    bb = _round_up(_cdiv(B_s, steps), sublane)
    return min(bb, _round_up(block_b, sublane))


def aggregator_forward(input_rep, labels, w1, b1, w2, b2, *,
                       block_b=4096, use_bf16_matmul=False,
                       slab_dtype=jnp.float32, store_hidden=True):
    """Fused MLP + CE kernel.  Weights are [in, out] (transposed from nn.Linear)."""
    B, IN = input_rep.shape
    H = w1.shape[1]
    O = w2.shape[1]
    W = _round_up(H + O + 1, 128)                      # lane-dense slab width

    in_dtype = jnp.bfloat16 if use_bf16_matmul else jnp.float32
    sublane = 16 if in_dtype == jnp.bfloat16 else 8

    bb = _pick_batch_tile(B, block_b, sublane)
    grid = (_cdiv(B, bb),)                             # ragged tail handled by Pallas

    # Casts happen at the HBM boundary (halves the input stream when bf16 is on);
    # no padding copy of the batch is made.
    x = input_rep.astype(in_dtype)
    w1c = w1.astype(in_dtype)
    w2c = w2.astype(in_dtype)
    b1c = b1.astype(jnp.float32).reshape(1, H)
    b2c = b2.astype(jnp.float32).reshape(1, O)
    lbl = labels.astype(jnp.int32).reshape(B, 1)

    in_bytes = jnp.dtype(in_dtype).itemsize
    out_bytes = jnp.dtype(slab_dtype).itemsize
    cost = pl.CostEstimate(
        flops=2 * B * (IN * H + H * O) + 4 * B * H,
        transcendentals=B * (O + 1),
        bytes_accessed=(B * IN * in_bytes + B * 4
                        + (IN * H + H * O) * in_bytes + (H + O) * 4
                        + B * W * out_bytes),
    )

    kernel = functools.partial(aggregator_kernel, store_hidden=store_hidden)

    slab = pl.pallas_call(
        kernel,
        out_shape=jax.ShapeDtypeStruct((B, W), slab_dtype),
        grid=grid,
        in_specs=[
            pl.BlockSpec((bb, IN), lambda i: (i, 0)),   # x tile
            pl.BlockSpec((IN, H), lambda i: (0, 0)),    # w1 (resident)
            pl.BlockSpec((1, H), lambda i: (0, 0)),     # b1
            pl.BlockSpec((H, O), lambda i: (0, 0)),     # w2
            pl.BlockSpec((1, O), lambda i: (0, 0)),     # b2
            pl.BlockSpec((bb, 1), lambda i: (i, 0)),    # labels tile
        ],
        out_specs=pl.BlockSpec((bb, W), lambda i: (i, 0)),
        compiler_params=pltpu.CompilerParams(
            dimension_semantics=("parallel",)),         # 2-TC split on v7x
        cost_estimate=cost,
    )(x, w1c, b1c, w2c, b2c, lbl)

    slab_f32 = slab.astype(jnp.float32)
    hidden = slab_f32[:, 0:H] if store_hidden else None
    out = slab_f32[:, H:H + O]
    loss = jnp.mean(slab_f32[:, H + O])                 # mean CE reduced in wrapper
    return out, loss, hidden


if __name__ == "__main__":
    # Config: hidden_size=32, output_size=2 (the loss_weight hint implies 2 classes).
    B, H, O = 8, 32, 2
    IN = 2 * H

    key = jax.random.PRNGKey(0)
    k_x, k_lbl, k_w1, k_b1, k_w2, k_b2 = jax.random.split(key, 6)

    # PyTorch-Linear-style init: U(-1/sqrt(fan_in), 1/sqrt(fan_in)), deterministic.
    bound1 = 1.0 / jnp.sqrt(jnp.float32(IN))
    bound2 = 1.0 / jnp.sqrt(jnp.float32(H))
    w1 = jax.random.uniform(k_w1, (IN, H), jnp.float32, -bound1, bound1)
    b1 = jax.random.uniform(k_b1, (H,), jnp.float32, -bound1, bound1)
    w2 = jax.random.uniform(k_w2, (H, O), jnp.float32, -bound2, bound2)
    b2 = jax.random.uniform(k_b2, (O,), jnp.float32, -bound2, bound2)

    input_rep = jax.random.normal(k_x, (B, IN), jnp.float32)
    labels = jax.random.randint(k_lbl, (B,), 0, O, jnp.int32)

    def ref_fwd(x, lbl):
        h = jnp.maximum(x @ w1 + b1, 0.0)
        o = h @ w2 + b2
        lse = jax.scipy.special.logsumexp(o, axis=-1)
        picked = jnp.take_along_axis(o, lbl[:, None].astype(jnp.int32), axis=1)[:, 0]
        return o, jnp.mean(lse - picked), h

    # 1) Module-sized case (single full-array block, exact f32).
    out, loss, hidden = aggregator_forward(input_rep, labels, w1, b1, w2, b2)
    jax.block_until_ready((out, loss, hidden))
    o_ref, loss_ref, h_ref = ref_fwd(input_rep, labels)
    assert jnp.allclose(out, o_ref, atol=1e-5)
    assert jnp.allclose(hidden, h_ref, atol=1e-5)
    assert jnp.allclose(loss, loss_ref, atol=1e-5)

    # 2) Larger batch, f32: exercises the >=2-step grid (v7x 2-TC split) and a
    #    ragged trailing block with NO wrapper padding copy.
    B2 = 300
    kx2, kl2 = jax.random.split(jax.random.PRNGKey(1), 2)
    x2 = jax.random.normal(kx2, (B2, IN), jnp.float32)
    lbl2 = jax.random.randint(kl2, (B2,), 0, O, jnp.int32)
    out2, loss2, hidden2 = aggregator_forward(x2, lbl2, w1, b1, w2, b2)
    jax.block_until_ready((out2, loss2, hidden2))
    o2_ref, loss2_ref, h2_ref = ref_fwd(x2, lbl2)
    assert jnp.allclose(out2, o2_ref, atol=1e-5)
    assert jnp.allclose(hidden2, h2_ref, atol=1e-5)
    assert jnp.allclose(loss2, loss2_ref, atol=1e-5)

    # 3) bf16-at-the-HBM-boundary path (matmul operands bf16, CE math f32).
    #    Gated behind the flag; checked with a loose tolerance by design.
    out3, loss3, hidden3 = aggregator_forward(x2, lbl2, w1, b1, w2, b2,
                                              use_bf16_matmul=True)
    jax.block_until_ready((out3, loss3, hidden3))
    assert jnp.allclose(out3, o2_ref, atol=1e-1, rtol=1e-1)
    assert jnp.allclose(hidden3, h2_ref, atol=1e-1, rtol=1e-1)
    assert jnp.allclose(loss3, loss2_ref, atol=1e-1, rtol=1e-1)

    print("KERNEL_OK")
</pallas_src>

<mosaic_0001>
module attributes {stable_mosaic.version = 11 : i64} {
  func.func @aggregator_kernel(%arg0: i32, %arg1: memref<8x64xf32, #tpu.memory_space<vmem>>, %arg2: memref<64x32xf32, #tpu.memory_space<vmem>>, %arg3: memref<1x32xf32, #tpu.memory_space<vmem>>, %arg4: memref<32x2xf32, #tpu.memory_space<vmem>>, %arg5: memref<1x2xf32, #tpu.memory_space<vmem>>, %arg6: memref<8x1xi32, #tpu.memory_space<vmem>>, %arg7: memref<8x128xf32, #tpu.memory_space<vmem>>) attributes {dimension_semantics = [#tpu.dimension_semantics<parallel>], iteration_bounds = array<i64: 1>, scalar_prefetch = 0 : i64, scratch_operands = 0 : i64, tpu.core_type = #tpu.core_type<tc>, window_params = [{transform_indices = @transform_0, window_bounds = array<i64: 8, 64>}, {pipeline_mode = #tpu.pipeline_mode<synchronous>, transform_indices = @transform_1, window_bounds = array<i64: 64, 32>}, {pipeline_mode = #tpu.pipeline_mode<synchronous>, transform_indices = @transform_2, window_bounds = array<i64: 1, 32>}, {pipeline_mode = #tpu.pipeline_mode<synchronous>, transform_indices = @transform_3, window_bounds = array<i64: 32, 2>}, {pipeline_mode = #tpu.pipeline_mode<synchronous>, transform_indices = @transform_4, window_bounds = array<i64: 1, 2>}, {transform_indices = @transform_5, window_bounds = array<i64: 8, 1>}, {transform_indices = @transform_6, window_bounds = array<i64: 8, 128>}]} {
    %c0 = arith.constant 0 : index
    %c0_0 = arith.constant 0 : index
    %0 = vector.load %arg1[%c0, %c0_0] : memref<8x64xf32, #tpu.memory_space<vmem>>, vector<8x64xf32>
    %c0_1 = arith.constant 0 : index
    %c0_2 = arith.constant 0 : index
    %1 = vector.load %arg2[%c0_1, %c0_2] : memref<64x32xf32, #tpu.memory_space<vmem>>, vector<64x32xf32>
    %c0_3 = arith.constant 0 : index
    %c0_4 = arith.constant 0 : index
    %2 = vector.load %arg4[%c0_3, %c0_4] : memref<32x2xf32, #tpu.memory_space<vmem>>, vector<32x2xf32>
    %cst = arith.constant dense<0.000000e+00> : vector<8x32xf32>
    %3 = tpu.matmul %0, %1, %cst {dimension_numbers = #tpu.dot_dimension_numbers<[1], [0], [0], [1], [0, 0, 1, 1], [], []>} : vector<8x64xf32>, vector<64x32xf32>, vector<8x32xf32> -> vector<8x32xf32>
    %c0_5 = arith.constant 0 : index
    %c0_6 = arith.constant 0 : index
    %4 = vector.load %arg3[%c0_5, %c0_6] : memref<1x32xf32, #tpu.memory_space<vmem>>, vector<1x32xf32>
    %5 = vector.broadcast %4 : vector<1x32xf32> to vector<8x32xf32>
    %6 = arith.addf %3, %5 : vector<8x32xf32>
    %cst_7 = arith.constant 0.000000e+00 : f32
    %7 = vector.broadcast %cst_7 : f32 to vector<8x32xf32>
    %8 = arith.maximumf %6, %7 : vector<8x32xf32>
    %cst_8 = arith.constant dense<0.000000e+00> : vector<8x2xf32>
    %9 = tpu.matmul %8, %2, %cst_8 {dimension_numbers = #tpu.dot_dimension_numbers<[1], [0], [0], [1], [0, 0, 1, 1], [], []>} : vector<8x32xf32>, vector<32x2xf32>, vector<8x2xf32> -> vector<8x2xf32>
    %c0_9 = arith.constant 0 : index
    %c0_10 = arith.constant 0 : index
    %10 = vector.load %arg5[%c0_9, %c0_10] : memref<1x2xf32, #tpu.memory_space<vmem>>, vector<1x2xf32>
    %11 = vector.broadcast %10 : vector<1x2xf32> to vector<8x2xf32>
    %12 = arith.addf %9, %11 : vector<8x2xf32>
    %c0_11 = arith.constant 0 : index
    %c0_12 = arith.constant 0 : index
    %13 = vector.load %arg6[%c0_11, %c0_12] : memref<8x1xi32, #tpu.memory_space<vmem>>, vector<8x1xi32>
    %14 = vector.extract_strided_slice %12 {offsets = [0, 0], sizes = [8, 1], strides = [1, 1]} : vector<8x2xf32> to vector<8x1xf32>
    %15 = vector.extract_strided_slice %12 {offsets = [0, 1], sizes = [8, 1], strides = [1, 1]} : vector<8x2xf32> to vector<8x1xf32>
    %16 = arith.maximumf %14, %15 : vector<8x1xf32>
    %17 = arith.subf %14, %16 : vector<8x1xf32>
    %18 = math.exp %17 : vector<8x1xf32>
    %19 = arith.subf %15, %16 : vector<8x1xf32>
    %20 = math.exp %19 : vector<8x1xf32>
    %21 = arith.addf %18, %20 : vector<8x1xf32>
    %22 = math.log %21 : vector<8x1xf32>
    %23 = arith.addf %16, %22 : vector<8x1xf32>
    %c0_i32 = arith.constant 0 : i32
    %24 = vector.broadcast %c0_i32 : i32 to vector<8x1xi32>
    %25 = arith.cmpi eq, %13, %24 : vector<8x1xi32>
    %26 = arith.select %25, %14, %15 : vector<8x1xi1>, vector<8x1xf32>
    %27 = arith.subf %23, %26 : vector<8x1xf32>
    %c0_13 = arith.constant 0 : index
    %c0_14 = arith.constant 0 : index
    %28 = vector.load %arg7[%c0_13, %c0_14] : memref<8x128xf32, #tpu.memory_space<vmem>>, vector<8x32xf32>
    tpu.vector_store %arg7[%c0_13, %c0_14], %8 {strides = array<i32>} : memref<8x128xf32, #tpu.memory_space<vmem>>, vector<8x32xf32>,
    %c0_15 = arith.constant 0 : index
    %c32 = arith.constant 32 : index
    %29 = vector.load %arg7[%c0_15, %c32] : memref<8x128xf32, #tpu.memory_space<vmem>>, vector<8x2xf32>
    tpu.vector_store %arg7[%c0_15, %c32], %12 {strides = array<i32>} : memref<8x128xf32, #tpu.memory_space<vmem>>, vector<8x2xf32>,
    %c0_16 = arith.constant 0 : index
    %c34 = arith.constant 34 : index
    %30 = vector.load %arg7[%c0_16, %c34] : memref<8x128xf32, #tpu.memory_space<vmem>>, vector<8x1xf32>
    tpu.vector_store %arg7[%c0_16, %c34], %27 {strides = array<i32>} : memref<8x128xf32, #tpu.memory_space<vmem>>, vector<8x1xf32>,
    return
  }
  func.func @transform_0(%arg0: i32) -> (i32, i32) {
    %c0_i32 = arith.constant 0 : i32
    %c0_i32_0 = arith.constant 0 : i32
    return %arg0, %c0_i32 : i32, i32
  }
  func.func @transform_1(%arg0: i32) -> (i32, i32) {
    %c0_i32 = arith.constant 0 : i32
    %c0_i32_0 = arith.constant 0 : i32
    %c0_i32_1 = arith.constant 0 : i32
    return %c0_i32, %c0_i32_0 : i32, i32
  }
  func.func @transform_2(%arg0: i32) -> (i32, i32) {
    %c0_i32 = arith.constant 0 : i32
    %c0_i32_0 = arith.constant 0 : i32
    %c0_i32_1 = arith.constant 0 : i32
    return %c0_i32, %c0_i32_0 : i32, i32
  }
  func.func @transform_3(%arg0: i32) -> (i32, i32) {
    %c0_i32 = arith.constant 0 : i32
    %c0_i32_0 = arith.constant 0 : i32
    %c0_i32_1 = arith.constant 0 : i32
    return %c0_i32, %c0_i32_0 : i32, i32
  }
  func.func @transform_4(%arg0: i32) -> (i32, i32) {
    %c0_i32 = arith.constant 0 : i32
    %c0_i32_0 = arith.constant 0 : i32
    %c0_i32_1 = arith.constant 0 : i32
    return %c0_i32, %c0_i32_0 : i32, i32
  }
  func.func @transform_5(%arg0: i32) -> (i32, i32) {
    %c0_i32 = arith.constant 0 : i32
    %c0_i32_0 = arith.constant 0 : i32
    return %arg0, %c0_i32 : i32, i32
  }
  func.func @transform_6(%arg0: i32) -> (i32, i32) {
    %c0_i32 = arith.constant 0 : i32
    %c0_i32_0 = arith.constant 0 : i32
    return %arg0, %c0_i32 : i32, i32
  }
}

</mosaic_0001>

<bundles_post_ra>
// kernel: tpu_custom_call.1
= control target key start
LH: loop header
LB: loop body
LE: loop exit
PB: predicated region body
PF: predicated region fallthrough
CT: control target
= control target key end

     0   :  { %v336_v1 = vmov 0.0   ;;  %vm337_vm0 = vmmov 0   ;;  %s429_s0 = inlined_call_operand.vmem [shape: f32[8,64], index: 0, kind: input, shape index: {}]   ;;  %s430_s1 = inlined_call_operand.vmem [shape: f32[64,32], index: 1, kind: input, shape index: {}]   ;;  %s431_s2 = inlined_call_operand.vmem [shape: f32[1,32], index: 2, kind: input, shape index: {}]   ;;  %s432_s3 = inlined_call_operand.vmem [shape: f32[32,2], index: 3, kind: input, shape index: {}]   ;;  %s433_s4 = inlined_call_operand.vmem [shape: f32[1,2], index: 4, kind: input, shape index: {}]   ;;  %s434_s5 = inlined_call_operand.vmem [shape: s32[8,1], index: 5, kind: input, shape index: {}]   ;;  %s435_s6 = inlined_call_operand.hbm [shape: f32[8,128], index: 6, kind: output, shape index: {}]  }
   0x1   :  { %v32_v0 = vld [vmem:[%s430_s1 + $0x38] sm:$0xff]  ;;  %271 = vmatprep.subr.mxu0 %v336_v1  ;;  %v31_v2 = vld [vmem:[%s430_s1 + $0x30] sm:$0xff]  ;;  %287 = vmatprep.mubr.msk.f32.mxu0 %vm337_vm0, %v336_v1  ;;  %v30_v3 = vld [vmem:[%s430_s1 + $0x28] sm:$0xff] }
   0x2   :  { %272 = vmatpush3.msra.mxu0 %v32_v0  ;;  %290 = vmatprep.subr.mxu1 %v336_v1  ;;  %v36_v4 = vld [vmem:[%s432_s3 + $0x18] sm:$0xff] }
   0x3   :  { %273 = vmatprep.subr.mxu0 %v336_v1  ;;  %298 = vmatprep.mubr.msk.f32.mxu1 %vm337_vm0, %v336_v1 }
   0x4   :  { %11 = vsyncpa [#allocation3], 0  ;;  %274 = vmatpush3.msra.mxu0 %v31_v2  ;;  %291 = vmatpush3.msra.mxu1 %v36_v4  ;;  %v29_v5 = vld [vmem:[%s430_s1 + $0x20] sm:$0xff]  ;;  %v28_v6 = vld [vmem:[%s430_s1 + $0x18] sm:$0xff]  ;;  %vm44_vm1 = vcmask 523264   ;;  %vm126_vm2 = vcmask 261120  }
   0x5   :  { %275 = vmatprep.subr.mxu0 %v336_v1  ;;  %292 = vmatprep.subr.mxu1 %v336_v1  ;;  %v27_v7 = vld [vmem:[%s430_s1 + $0x10] sm:$0xff]  ;;  %v26_v8 = vld [vmem:[%s430_s1 + $0x8] sm:$0xff]  ;;  %v25_v9 = vld [vmem:[%s430_s1] sm:$0xff]  ;;  %s339_s25 = smov 1   ;;  %vm231_vm3 = vcmask 277760   ;;  %s341_s27 = smov 34  }
   0x6   :  { %276 = vmatpush3.msra.mxu0 %v30_v3  ;;  %v24_v10 = vld [vmem:[%s429_s0] sm:$0xff]  ;;  %v35_v11 = vld [vmem:[%s432_s3 + $0x10] sm:$0xff]  ;;  %v34_v12 = vld [vmem:[%s432_s3 + $0x8] sm:$0xff]  ;;  %s342_s28 = smov [#allocation2]   ;;  %vm237_vm5 = vcmask 285968  }
   0x7   :  { %277 = vmatprep.subr.mxu0 %v336_v1  ;;  %293 = vmatpush3.msra.mxu1 %v35_v11  ;;  %v33_v13 = vld [vmem:[%s432_s3] sm:$0xff]  ;;  %s338_s3 = smov 127   ;;  %s245_s29 = sshll.u32 %s342_s28, 4  ;;  %s246_s29 = int_to_ptr.vmem [resolvable:$true] %s245_s29 }
   0x8   :  { %278 = vmatpush3.msra.mxu0 %v29_v5  ;;  %294 = vmatprep.subr.mxu1 %v336_v1  ;;  %v253_v14 = vld [vmem:[%s431_s2] ss:$0 sm:$0xff]  ;;  %s340_s2 = smov 32   ;;  %s314_s30 = scalar_lea.vmem %s246_s29, 128 }
   0x9   :  { %279 = vmatprep.subr.mxu0 %v336_v1  ;;  %295 = vmatpush3.msra.mxu1 %v34_v12  ;;  %v255_v19 = vld [vmem:[%s433_s4] ss:$0 sm:$0xff]  ;;  %p315_p0 = scmp.ne.s32.totalorder %s246_s29, %s314_s30  ;;  %p319_p1 = scmp.lt.s32.totalorder %s246_s29, %s246_s29 }
   0xa   :  { %280 = vmatpush3.msra.mxu0 %v28_v6  ;;  %296 = vmatprep.subr.mxu1 %v336_v1  ;;  %v200_v35 = vld [vmem:[%s434_s5] sm:$0xff]  ;;  %p320_p2 = scmp.lt.s32.totalorder %s314_s30, %s314_s30 }
   0xb   :  { %281 = vmatprep.subr.mxu0 %v336_v1  ;;  %297 = vmatpush3.msra.mxu1 %v33_v13  ;;  %vm224_vm4 = vcmp.eq.s32.totalorder %v200_v35, 0 }
   0xc   :  { %282 = vmatpush3.msra.mxu0 %v27_v7  ;;  %p321_p3 = por %p320_p2, %p319_p1 }
   0xd   :  { %283 = vmatprep.subr.mxu0 %v336_v1 }
   0xe   :  { %284 = vmatpush3.msra.mxu0 %v26_v8  ;;  %p322_p4 = pnand %p321_p3, %p315_p0 }
   0xf   :  { %285 = vmatprep.subr.mxu0 %v336_v1 }
  0x10   :  { %286 = vmatpush3.msra.mxu0 %v25_v9 }
  0x11   :  { %288 = vmatmul.mubr.msk.f32.vlgmr.msra.gmra.mxu0 %vm44_vm1, %v24_v10 }
  0xd1   :  { %v114_v15 = vpop.f32.mrf.mxu0 }
  0xd2   :  { %v115_v16 = vadd.f32 %v253_v14, %v114_v15 }
  0xd3   :  { %v289_v17 = vpop.f32.mrf.mxu0 }
  0xd4   :  { %v118_v18 = vmax.f32 %v115_v16, 0.0 }
  0xd6   :  { %227 = vst.msk [vmem:[#allocation2] sm:$0xff] %vm126_vm2, %v118_v18  ;;  %299 = vmatmul.mubr.msk.f32.vlgmr.msra.gmra.mxu1 %vm126_vm2, %v118_v18 }
 0x196   :  { %v196_v20 = vpop.f32.mrf.mxu1 }
 0x197   :  { %v197_v21 = vadd.f32 %v255_v19, %v196_v20 }
 0x198   :  { %v300_v22 = vpop.f32.mrf.mxu1 }
 0x199   :  { %202 = vrot.lane.b32.xlu0 %v197_v21, %s338_s3 }
 0x20b   :  { %v203_v23 = vpop.permute.xlu0 %202 }
 0x20c   :  { %v205_v24 = vmax.f32 %v197_v21, %v203_v23  ;;  %v225_v39 = vsel %vm224_vm4, %v197_v21, %v203_v23 }
 0x20e   :  { %210 = vrot.lane.b32.xlu0 %v205_v24, %s339_s25  ;;  %v206_v29 = vsub.f32 %v197_v21, %v205_v24 }
 0x210   :  { %v207_v30 = vmul.f32 1.442695, %v206_v29 }
 0x280   :  { %v211_v25 = vpop.permute.xlu0 %210 }
 0x281   :  { %v213_v26 = vsub.f32 %v197_v21, %v211_v25 }
 0x283   :  { %v214_v27 = vmul.f32 1.442695, %v213_v26 }
 0x285   :  { %308 = vpow2.f32 %v214_v27 }
 0x286   :  { %310 = vpow2.f32 %v207_v30 }
 0x292   :  { %v309_v28 = vpop.eup %308 }
 0x293   :  { %217 = vrot.lane.b32.xlu1 %v309_v28, %s338_s3  ;;  %v311_v31 = vpop.eup %310 }
 0x297   :  { %228 = vrot.lane.b32.xlu1 %v197_v21, %s340_s2 }
 0x305   :  { %v218_v32 = vpop.permute.xlu1 %217 }
 0x306   :  { %v220_v33 = vadd.f32 %v311_v31, %v218_v32 }
 0x308   :  { %312 = vlog2.f32 %v220_v33 }
 0x309   :  { %v229_v34 = vpop.permute.xlu1 %228 }
 0x30a   :  { %232 = vst.msk [vmem:[#allocation2] sm:$0xff] %vm231_vm3, %v229_v34 }
 0x315   :  { %v313_v36 = vpop.eup %312 }
 0x316   :  { %v222_v37 = vmul.f32 0.6931472, %v313_v36 }
 0x318   :  { %v223_v38 = vadd.f32 %v222_v37, %v205_v24 }
 0x31a   :  { %v226_v40 = vsub.f32 %v223_v38, %v225_v39 }
 0x31c   :  { %234 = vrot.lane.b32.xlu0 %v226_v40, %s341_s27 }
 0x38e   :  { %v235_v41 = vpop.permute.xlu0 %234 }
 0x38f   :  { %238 = vst.msk [vmem:[#allocation2] sm:$0xff] %vm237_vm5, %v235_v41 }
 0x390   :  { %325 = shalt.err (!%p322_p4)
}
 0x391   :  { %248 = dma.vmem_to_hbm [thread:$0]  %s246_s29, 128, %s435_s6, [#allocation3]  }
 0x392   :  { %334 = dma.done.wait [#allocation3], 128  }
 0x393   :  { %335 = vsyncadd [#allocation3], 4294967168 }
 0x394   :  { %252 = vsyncpa [#allocation3], 1 }

</bundles_post_ra>
